<compile_context>
chip_gen: v5e
topology: v5e:2x2
jax: 0.10.0
libtpu: 0.0.40
codegen_flags: <defaults>
</compile_context>

<pallas_src>
import functools

import jax
import jax.numpy as jnp
from jax.experimental import pallas as pl
from jax.experimental.pallas import tpu as pltpu


_LANES = 128
_MIN_GRID = 4                 # >=4 blocks: pipelining + v7x dual-TC sharding
_MIN_PALLAS_ELEMENTS = 16384  # below this, plain jnp beats custom-call overhead


# ---------------------------------------------------------------------------
# Activation functions (compile-time dispatch, like getattr(torch.nn, name)())
# ---------------------------------------------------------------------------
def _relu(x):
    return jnp.maximum(x, jnp.zeros_like(x))


def _silu(x):
    return x * jax.nn.sigmoid(x)


def _gelu_exact(x):
    # torch.nn.GELU() default: exact erf-based gelu.
    return jax.nn.gelu(x, approximate=False)


def _gelu_tanh(x):
    # Cheaper tanh approximation (EUP path); opt-in, changes numerics vs torch.
    return jax.nn.gelu(x, approximate=True)


def _sigmoid(x):
    return jax.nn.sigmoid(x)


def _tanh(x):
    return jnp.tanh(x)


def _leaky_relu(x):
    # torch.nn.LeakyReLU() default negative_slope=0.01
    return jnp.where(x >= 0, x, 0.01 * x)


def _elu(x):
    # torch.nn.ELU() default alpha=1.0
    return jnp.where(x > 0, x, jnp.expm1(x))


_ACTIVATIONS = {
    "ReLU": _relu,
    "SiLU": _silu,
    "GELU": _gelu_exact,
    "Sigmoid": _sigmoid,
    "Tanh": _tanh,
    "LeakyReLU": _leaky_relu,
    "ELU": _elu,
}


def _get_act_fn(activation_type: str, approximate_gelu: bool):
    if activation_type not in _ACTIVATIONS:
        raise ValueError(
            f"Unsupported activation: {activation_type!r}; "
            f"supported: {sorted(_ACTIVATIONS)}")
    if activation_type == "GELU" and approximate_gelu:
        return _gelu_tanh
    return _ACTIVATIONS[activation_type]


# ---------------------------------------------------------------------------
# Block sizing
# ---------------------------------------------------------------------------
def _round_up(v: int, m: int) -> int:
    return ((v + m - 1) // m) * m


@functools.lru_cache(maxsize=1)
def _target_block_bytes() -> int:
    """Per-block byte target, per chip generation."""
    try:
        kind = jax.devices()[0].device_kind.lower()
    except Exception:  # pragma: no cover - defensive
        kind = ""
    if "v7" in kind:
        # 3.2 TB/s HBM: 2 MiB blocks are serviced in ~1.3 us, so the ~0.35 us
        # per-step overhead is ~25%; 4 MiB cuts it to ~13%.  Double-buffered
        # in+out footprint = 16 MiB < 32 MiB default scoped VMEM.
        return 4 * 1024 * 1024
    # v5e/v6e: 2 MiB blocks (footprint 8 MiB) stay under v5e's 16 MiB default
    # scoped VMEM; block-size gains plateau ~1-2 MiB for streaming elementwise.
    return 2 * 1024 * 1024


def _pick_tile_rows(rows: int, itemsize: int) -> int:
    """Tile rows for the 2-D (rows, 128) path: <= block target, >= _MIN_GRID blocks."""
    sub = max(8, 32 // itemsize)  # packed-sublane multiple: f32 8, bf16 16, i8 32
    target = max(sub, (_target_block_bytes() // (_LANES * itemsize)) // sub * sub)
    # Cap the tile so the grid has at least _MIN_GRID blocks (pipelining + v7x).
    cap = max(sub, _round_up((rows + _MIN_GRID - 1) // _MIN_GRID, sub))
    return min(target, cap)


def _pick_tile_elems(total: int, itemsize: int) -> int:
    """Tile size (elements) for the rank-1 ragged path; multiple of packed (sub,128)."""
    unit = _LANES * max(8, 32 // itemsize)
    target = max(unit, (_target_block_bytes() // itemsize) // unit * unit)
    cap = max(unit, _round_up((total + _MIN_GRID - 1) // _MIN_GRID, unit))
    return min(target, cap)


# ---------------------------------------------------------------------------
# Pallas kernel: elementwise activation on one VMEM tile.
# ---------------------------------------------------------------------------
def _act_kernel(x_ref, o_ref, *, act_fn):
    o_ref[...] = act_fn(x_ref[...]).astype(o_ref.dtype)


def _call_pallas(x_arr: jax.Array, act_fn, block_shape, donate: bool = False):
    """Run the elementwise kernel over a single-axis cdiv grid (rank 1 or 2 blocks)."""
    ndim = len(block_shape)
    idx_map = (lambda i: (i, 0)) if ndim == 2 else (lambda i: (i,))
    grid = (pl.cdiv(x_arr.shape[0], block_shape[0]),)
    extra = {"input_output_aliases": {0: 0}} if donate else {}
    # NOTE: on v7x one could try pipeline_mode=pl.Buffered(3) on the input
    # BlockSpec for 2-4 MiB blocks; keep only if measured.
    return pl.pallas_call(
        functools.partial(_act_kernel, act_fn=act_fn),
        out_shape=jax.ShapeDtypeStruct(x_arr.shape, x_arr.dtype),
        grid_spec=pltpu.PrefetchScalarGridSpec(
            num_scalar_prefetch=0,
            grid=grid,
            in_specs=[pl.BlockSpec(block_shape, idx_map)],
            out_specs=pl.BlockSpec(block_shape, idx_map),
        ),
        compiler_params=pltpu.CompilerParams(
            dimension_semantics=("parallel",),
        ),
        **extra,
    )(x_arr)


# ---------------------------------------------------------------------------
# One-time probe: is a rank-1 blocked kernel with a masked boundary available?
# ---------------------------------------------------------------------------
_RAGGED_1D_OK = None


def _ragged_1d_supported() -> bool:
    global _RAGGED_1D_OK
    if _RAGGED_1D_OK is None:
        try:
            probe = jnp.linspace(-4.0, 4.0, 2 * 1024 + 7, dtype=jnp.float32)
            out = _call_pallas(probe, _silu, (1024,))
            jax.block_until_ready(out)
            ref = probe * jax.nn.sigmoid(probe)
            _RAGGED_1D_OK = bool(jnp.allclose(out, ref, atol=1e-6, rtol=1e-6))
        except Exception:
            _RAGGED_1D_OK = False
    return _RAGGED_1D_OK


# ---------------------------------------------------------------------------
# Public API
# ---------------------------------------------------------------------------
def set_activation(x: jax.Array, activation_type: str, *,
                   approximate_gelu: bool = False,
                   donate_input: bool = False) -> jax.Array:
    """Pallas TPU implementation of SetActivation(activation_type)(x)."""
    act_fn = _get_act_fn(activation_type, approximate_gelu)

    orig_shape = x.shape
    total = x.size
    if total == 0:
        return x
    # Tiny inputs: custom-call + reshape overhead dominates; let XLA fuse it.
    if total < _MIN_PALLAS_ELEMENTS:
        return act_fn(x).astype(x.dtype)

    itemsize = jnp.dtype(x.dtype).itemsize
    flat = x.reshape(-1)

    if total % _LANES == 0:
        # Common case: lane-dense (rows, 128) slab, no padding, masked cdiv grid.
        rows = total // _LANES
        x2d = flat.reshape(rows, _LANES)
        tile_rows = _pick_tile_rows(rows, itemsize)
        out2d = _call_pallas(x2d, act_fn, (tile_rows, _LANES), donate=donate_input)
        return out2d.reshape(orig_shape)

    # Ragged total: keep the data flat (no full-tensor pad / slice HBM passes)
    # and let Pallas mask the boundary block of a rank-1 cdiv grid.
    if _ragged_1d_supported():
        tile_elems = _pick_tile_elems(total, itemsize)
        out = _call_pallas(flat, act_fn, (tile_elems,), donate=donate_input)
        return out.reshape(orig_shape)

    # Fallback (rank-1 blocks unavailable): pad to a lane multiple.  Costs two
    # extra HBM passes; only reached on ragged shapes when the probe fails.
    pad = _LANES - (total % _LANES)
    flat_p = jnp.pad(flat, (0, pad))
    rows = (total + pad) // _LANES
    x2d = flat_p.reshape(rows, _LANES)
    tile_rows = _pick_tile_rows(rows, itemsize)
    out2d = _call_pallas(x2d, act_fn, (tile_rows, _LANES))
    return out2d.reshape(-1)[:total].reshape(orig_shape)


class SetActivation:
    """Mirror of the PyTorch module: act = SetActivation('SiLU'); y = act(x)."""

    def __init__(self, activation_type: str, approximate_gelu: bool = False):
        self.activation_type = activation_type
        self.approximate_gelu = approximate_gelu
        _get_act_fn(activation_type, approximate_gelu)  # validate eagerly

    def __call__(self, x: jax.Array) -> jax.Array:
        return set_activation(x, self.activation_type,
                              approximate_gelu=self.approximate_gelu)


# ---------------------------------------------------------------------------
# Demo / self-test
# ---------------------------------------------------------------------------
if __name__ == "__main__":
    key = jax.random.PRNGKey(0)
    failures = []

    def expect(name, cond):
        if not cond:
            failures.append(name)

    def close(a, b, tol=1e-5):
        return bool(jnp.allclose(a, b, atol=tol, rtol=tol))

    refs = {
        "ReLU": lambda v: jnp.maximum(v, 0.0),
        "SiLU": lambda v: v * jax.nn.sigmoid(v),
        "GELU": lambda v: jax.nn.gelu(v, approximate=False),
        "Sigmoid": jax.nn.sigmoid,
        "Tanh": jnp.tanh,
        "LeakyReLU": lambda v: jnp.where(v >= 0, v, 0.01 * v),
        "ELU": lambda v: jnp.where(v > 0, v, jnp.expm1(v)),
    }

    # 1) Small NCHW feature map (module's typical input) -> fast jnp path.
    key, k1 = jax.random.split(key)
    x_small = jax.random.normal(k1, (2, 4, 16, 16), dtype=jnp.float32)
    for name, ref_fn in refs.items():
        y = set_activation(x_small, name)
        jax.block_until_ready(y)
        expect(f"small-{name}", y.shape == x_small.shape and y.dtype == x_small.dtype)
        expect(f"small-{name}-val", close(y, ref_fn(x_small)))

    # 2) Larger, 128-aligned tensor -> 2-D lane-dense Pallas kernel, 4-block grid.
    key, k2 = jax.random.split(key)
    x_big = jax.random.normal(k2, (4, 16, 96, 128), dtype=jnp.float32)
    for name in ("ReLU", "SiLU", "GELU", "Tanh", "LeakyReLU", "ELU", "Sigmoid"):
        y = SetActivation(name)(x_big)
        jax.block_until_ready(y)
        expect(f"big-{name}", y.shape == x_big.shape and y.dtype == x_big.dtype)
        expect(f"big-{name}-val", close(y, refs[name](x_big)))

    # 3) Ragged total (not a multiple of 128), big enough for the kernel path
    #    -> rank-1 masked-boundary path (or pad fallback if unsupported).
    key, k3 = jax.random.split(key)
    x_ragged = jax.random.normal(k3, (3, 5, 61, 47), dtype=jnp.float32)
    y = set_activation(x_ragged, "SiLU")
    jax.block_until_ready(y)
    expect("ragged-SiLU", y.shape == x_ragged.shape and close(y, refs["SiLU"](x_ragged)))

    # 4) bf16 input -> packed-sublane tile sizing; ReLU is exact in bf16.
    key, k4 = jax.random.split(key)
    x_bf16 = jax.random.normal(k4, (2, 32, 64, 128), dtype=jnp.bfloat16)
    y = set_activation(x_bf16, "ReLU")
    jax.block_until_ready(y)
    expect("bf16-ReLU", y.dtype == jnp.bfloat16
           and bool(jnp.all(y == jnp.maximum(x_bf16, jnp.bfloat16(0)))))

    # 5) Approximate (tanh) GELU path, opt-in flag.
    y = set_activation(x_big, "GELU", approximate_gelu=True)
    jax.block_until_ready(y)
    expect("gelu-tanh", close(y, jax.nn.gelu(x_big, approximate=True)))

    if failures:
        print("KERNEL_MISMATCH: " + ", ".join(failures))
    else:
        print("KERNEL_OK")
</pallas_src>

<mosaic_0001>
module attributes {stable_mosaic.version = 11 : i64} {
  func.func @_act_kernel(%arg0: i32, %arg1: memref<1536x128xf32, #tpu.memory_space<vmem>>, %arg2: memref<1536x128xf32, #tpu.memory_space<vmem>>) attributes {dimension_semantics = [#tpu.dimension_semantics<parallel>], iteration_bounds = array<i64: 4>, scalar_prefetch = 0 : i64, scratch_operands = 0 : i64, tpu.core_type = #tpu.core_type<tc>, window_params = [{transform_indices = @transform_0, window_bounds = array<i64: 1536, 128>}, {transform_indices = @transform_1, window_bounds = array<i64: 1536, 128>}]} {
    %c0 = arith.constant 0 : index
    %c0_0 = arith.constant 0 : index
    %0 = vector.load %arg1[%c0, %c0_0] : memref<1536x128xf32, #tpu.memory_space<vmem>>, vector<1536x128xf32>
    %cst = arith.constant 0.000000e+00 : f32
    %1 = vector.broadcast %cst : f32 to vector<1536x128xf32>
    %2 = arith.maximumf %0, %1 : vector<1536x128xf32>
    %c0_1 = arith.constant 0 : index
    %c0_2 = arith.constant 0 : index
    %3 = vector.load %arg2[%c0_1, %c0_2] : memref<1536x128xf32, #tpu.memory_space<vmem>>, vector<1536x128xf32>
    tpu.vector_store %arg2[%c0_1, %c0_2], %2 {strides = array<i32>} : memref<1536x128xf32, #tpu.memory_space<vmem>>, vector<1536x128xf32>,
    return
  }
  func.func @transform_0(%arg0: i32) -> (i32, i32) {
    %c0_i32 = arith.constant 0 : i32
    %c0_i32_0 = arith.constant 0 : i32
    return %arg0, %c0_i32 : i32, i32
  }
  func.func @transform_1(%arg0: i32) -> (i32, i32) {
    %c0_i32 = arith.constant 0 : i32
    %c0_i32_0 = arith.constant 0 : i32
    return %arg0, %c0_i32 : i32, i32
  }
}

</mosaic_0001>

<bundles_post_ra>
// kernel: tpu_custom_call.1
= control target key start
LH: loop header
LB: loop body
LE: loop exit
PB: predicated region body
PF: predicated region fallthrough
CT: control target
= control target key end

     0   :  { %6 = vsyncpa [#allocation3], 0  ;;  %s1482_s0 = inlined_call_operand.hbm [shape: f32[6144,128], index: 0, kind: input, shape index: {}]   ;;  %s1483_s1 = inlined_call_operand.hbm [shape: f32[6144,128], index: 1, kind: output, shape index: {}]  }
   0x1   :  { %8 = vsyncpa [#allocation3 + $0x1], 0 }
   0x2   :  { %9 = vsyncpa [#allocation4], 0 }
   0x3   :  { %11 = vsyncpa [#allocation4 + $0x1], 0  ;;  %s978_s6 = smov 0   ;;  %s980_s7 = smov 0  }
   0x4   :  { %s982_s8 = smov 0   ;;  %s984_s9 = smov 0  }
   0x5 LB: > { %s999_s10 = sadd.s32 4294967295, %s962_s9   ;;  %s804_s11 = sadd.s32 4294967294, %s962_s9   ;;  %s962_s9 = sphi %s984_s9, %s1491_s9   ;;  %s958_s8 = sphi %s982_s8, %s1490_s8   ;;  %s954_s7 = sphi %s980_s7, %s1489_s7   ;;  %s950_s6 = sphi %s978_s6, %s1488_s6  }
   0x6   : > { %s1003_s12 = sadd.s32 1, %s962_s9   ;;  %s24_s13 = sadd.s32 1, %s958_s8 }
   0x7   : > { %s21_s14 = ssub.s32 %s962_s9, %s1003_s12  ;;  %p31_p0 = scmp.ne.s32.totalorder %s958_s8, %s954_s7 }
   0x8   : > { %p22_p1 = scmp.eq.s32.totalorder %s21_s14, 0  ;;  %p32_p2 = scmp.eq.s32.totalorder %s962_s9, 0 }
   0x9   : > { %p37_p3 = scmp.ne.s32.totalorder %s954_s7, %s950_s6  ;;  %p38_p4 = scmp.eq.s32.totalorder %s999_s10, 0 }
   0xa   : > { %s1015_s15 = scalar_select %p22_p1, %s958_s8, %s24_s13  }
   0xb   : > { %p33_p5 = por %p32_p2, %p31_p0  ;;  %p1017_p6 = por %p38_p4, %p37_p3 }
   0xc   : > { %p61_p7 = scmp.eq.s32.totalorder %s999_s10, 3  ;;  %p67_p8 = scmp.eq.s32.totalorder %s804_s11, 3 }
   0xd   : > { %p828_p9 = scmp.lt.s32.totalorder %s962_s9, 4  ;;  %s87_s19 = sand.u32 1, %s958_s8  }
   0xe   : > { %p1023_p10 = por %p61_p7, %p31_p0  ;;  %p1027_p11 = por %p67_p8, %p37_p3 }
   0xf   : > { %s812_s20 = smul.u32 1536, %s962_s9  ;;  %p1036_p12 = pnand %p828_p9, %p33_p5 }
  0x10   : > { %s814_s21 = smul.u32 1536, %s87_s19  ;;  %s88_s29 = scalar_lea.sflag [#allocation3], %s87_s19 }
  0x11   : > { %s96_s24 = scalar_lea.hbm %s1482_s0, %s812_s20  ;;  %p870_p0 = pneg %p1036_p12 }
  0x12   : > { %s97_s26 = sshll.u32 %s96_s24, 4  ;;  %s91_s27 = scalar_lea.vmem [#allocation2], %s814_s21  ;;  %s98_s26 = int_to_ptr.hbm [resolvable:$true] %s97_s26 }
  0x13   : > { %s99_s28 = sshll.u32 %s91_s27, 4  ;;  %s866_s30 = sshra.s32 %s98_s26, 4  ;;  %s100_s28 = int_to_ptr.vmem [resolvable:$true] %s99_s28  ;;  %s867_s30 = int_to_ptr.hbm [resolvable:$true] %s866_s30 }
  0x14   : > { %s868_s2 = scalar_lea.hbm %s867_s30, 1536  ;;  %s873_s5 = scalar_lea.hbm %s1482_s0, 6144 }
  0x15   : > { %p869_p13 = scmp.ne.s32.totalorder %s867_s30, %s868_s2  ;;  %p874_p3 = scmp.lt.s32.totalorder %s867_s30, %s1482_s0 }
  0x16   : > { %p875_p4 = scmp.lt.s32.totalorder %s873_s5, %s868_s2 }
  0x17   : > { %p871_p1 = pnand %p870_p0, %p869_p13 }
  0x18   : > { %p876_p5 = por %p875_p4, %p874_p3 }
  0x19   : > { %p872_p2 = pneg %p871_p1 }
  0x1b   : > { %p877_p7 = pnand %p876_p5, %p872_p2 }
  0x1d   : > { %880 = shalt.err (!%p877_p7)
}
  0x1e   : > { %s964_s14 = smov 128   ;;  %s965_s19 = smov 8  }
  0x1f   : > { %823 = dma.hbm_to_vmem [thread:$0]  (!%p1036_p12), %s98_s26, 24576, %s100_s28, %s88_s29, %s964_s14, %s964_s14, %s965_s19  }
  0x20   : > { %p808_p8 = scmp.ge.s32.totalorder %s962_s9, 1  ;;  %p107_p9 = scmp.lt.s32.totalorder %s962_s9, 5 }
  0x22   : > { %p108_p13 = pnand %p808_p8, %p107_p9 }
  0x23   : > { %s1053_s20 = sand.u32 (!%p108_p13), 1, %s954_s7  }
  0x24   : > { %111 = sbr.rel (%p108_p13) target bundleno = 240 (0xf0), region = 24  ;;  %s114_s22 = scalar_lea.sflag (!%p108_p13), [#allocation3], %s1053_s20 }
  0x25   : > { %s815_s21 = smul.u32 (!%p108_p13), 1536, %s1053_s20 }
  0x27   : > { %s1057_s23 = scalar_lea.vmem (!%p108_p13), [#allocation2], %s815_s21 }
  0x29   : > { %941 = dma.done.wait (%p1017_p6), %s114_s22, 24576  }
  0x2a   : > { %943 = vsyncadd (%p1017_p6), %s114_s22, 4294942720  ;;  %v139_v0 = vld [vmem:[%s1057_s23] sm:$0xff]  ;;  %v140_v1 = vld [vmem:[%s1057_s23 + $0x8] sm:$0xff]  ;;  %s1070_s16 = scalar_lea.vmem [#allocation5], %s815_s21  ;;  %s813_s24 = smul.u32 1536, %s999_s10 }
  0x2b   : > { %v141_v2 = vld [vmem:[%s1057_s23 + $0x10] sm:$0xff]  ;;  %v331_v3 = vmax.f32 %v139_v0, 0.0  ;;  %v332_v4 = vmax.f32 %v140_v1, 0.0  ;;  %v142_v6 = vld [vmem:[%s1057_s23 + $0x18] sm:$0xff]  ;;  %v143_v7 = vld [vmem:[%s1057_s23 + $0x20] sm:$0xff]  ;;  %s728_s27 = sshll.u32 %s1070_s16, 4  ;;  %s729_s27 = int_to_ptr.vmem [resolvable:$true] %s728_s27 }
  0x2c   : > { %v333_v5 = vmax.f32 %v141_v2, 0.0  ;;  %v144_v8 = vld [vmem:[%s1057_s23 + $0x28] sm:$0xff]  ;;  %v334_v9 = vmax.f32 %v142_v6, 0.0  ;;  %v145_v10 = vld [vmem:[%s1057_s23 + $0x30] sm:$0xff]  ;;  %v335_v11 = vmax.f32 %v143_v7, 0.0  ;;  %v146_v12 = vld [vmem:[%s1057_s23 + $0x38] sm:$0xff]  ;;  %s727_s26 = scalar_lea.hbm %s1483_s1, %s813_s24 }
  0x2d   : > { %523 = vst [vmem:[%s1070_s16] sm:$0xff] %v331_v3  ;;  %v336_v13 = vmax.f32 %v144_v8, 0.0  ;;  %v147_v14 = vld [vmem:[%s1057_s23 + $0x40] sm:$0xff]  ;;  %v337_v15 = vmax.f32 %v145_v10, 0.0  ;;  %v148_v16 = vld [vmem:[%s1057_s23 + $0x48] sm:$0xff]  ;;  %v338_v17 = vmax.f32 %v146_v12, 0.0  ;;  %v149_v18 = vld [vmem:[%s1057_s23 + $0x50] sm:$0xff] }
  0x2e   : > { %524 = vst [vmem:[%s1070_s16 + $0x8] sm:$0xff] %v332_v4  ;;  %v339_v19 = vmax.f32 %v147_v14, 0.0  ;;  %v150_v20 = vld [vmem:[%s1057_s23 + $0x58] sm:$0xff]  ;;  %v340_v21 = vmax.f32 %v148_v16, 0.0  ;;  %v151_v22 = vld [vmem:[%s1057_s23 + $0x60] sm:$0xff]  ;;  %v341_v23 = vmax.f32 %v149_v18, 0.0 }
  0x2f   : > { %525 = vst [vmem:[%s1070_s16 + $0x10] sm:$0xff] %v333_v5  ;;  %v152_v24 = vld [vmem:[%s1057_s23 + $0x68] sm:$0xff]  ;;  %v342_v25 = vmax.f32 %v150_v20, 0.0  ;;  %v153_v26 = vld [vmem:[%s1057_s23 + $0x70] sm:$0xff]  ;;  %v343_v27 = vmax.f32 %v151_v22, 0.0  ;;  %v154_v28 = vld [vmem:[%s1057_s23 + $0x78] sm:$0xff] }
  0x30   : > { %526 = vst [vmem:[%s1070_s16 + $0x18] sm:$0xff] %v334_v9  ;;  %v344_v29 = vmax.f32 %v152_v24, 0.0  ;;  %v155_v30 = vld [vmem:[%s1057_s23 + $0x80] sm:$0xff]  ;;  %v345_v31 = vmax.f32 %v153_v26, 0.0  ;;  %v156_v32 = vld [vmem:[%s1057_s23 + $0x88] sm:$0xff]  ;;  %v346_v33 = vmax.f32 %v154_v28, 0.0 }
  0x31   : > { %527 = vst [vmem:[%s1070_s16 + $0x20] sm:$0xff] %v335_v11  ;;  %v157_v34 = vld [vmem:[%s1057_s23 + $0x90] sm:$0xff]  ;;  %v347_v35 = vmax.f32 %v155_v30, 0.0  ;;  %v158_v36 = vld [vmem:[%s1057_s23 + $0x98] sm:$0xff]  ;;  %v348_v37 = vmax.f32 %v156_v32, 0.0  ;;  %v159_v38 = vld [vmem:[%s1057_s23 + $0xa0] sm:$0xff] }
  0x32   : > { %528 = vst [vmem:[%s1070_s16 + $0x28] sm:$0xff] %v336_v13  ;;  %v349_v39 = vmax.f32 %v157_v34, 0.0  ;;  %v160_v40 = vld [vmem:[%s1057_s23 + $0xa8] sm:$0xff]  ;;  %v350_v41 = vmax.f32 %v158_v36, 0.0  ;;  %v161_v42 = vld [vmem:[%s1057_s23 + $0xb0] sm:$0xff]  ;;  %v351_v43 = vmax.f32 %v159_v38, 0.0 }
  0x33   : > { %529 = vst [vmem:[%s1070_s16 + $0x30] sm:$0xff] %v337_v15  ;;  %v162_v44 = vld [vmem:[%s1057_s23 + $0xb8] sm:$0xff]  ;;  %v352_v45 = vmax.f32 %v160_v40, 0.0  ;;  %v163_v46 = vld [vmem:[%s1057_s23 + $0xc0] sm:$0xff]  ;;  %v353_v47 = vmax.f32 %v161_v42, 0.0  ;;  %v164_v48 = vld [vmem:[%s1057_s23 + $0xc8] sm:$0xff] }
  0x34   : > { %530 = vst [vmem:[%s1070_s16 + $0x38] sm:$0xff] %v338_v17  ;;  %v354_v49 = vmax.f32 %v162_v44, 0.0  ;;  %v165_v50 = vld [vmem:[%s1057_s23 + $0xd0] sm:$0xff]  ;;  %v355_v51 = vmax.f32 %v163_v46, 0.0  ;;  %v166_v52 = vld [vmem:[%s1057_s23 + $0xd8] sm:$0xff]  ;;  %v356_v53 = vmax.f32 %v164_v48, 0.0 }
  0x35   : > { %531 = vst [vmem:[%s1070_s16 + $0x40] sm:$0xff] %v339_v19  ;;  %v167_v54 = vld [vmem:[%s1057_s23 + $0xe0] sm:$0xff]  ;;  %v357_v55 = vmax.f32 %v165_v50, 0.0  ;;  %v168_v56 = vld [vmem:[%s1057_s23 + $0xe8] sm:$0xff]  ;;  %v358_v57 = vmax.f32 %v166_v52, 0.0  ;;  %v169_v58 = vld [vmem:[%s1057_s23 + $0xf0] sm:$0xff] }
  0x36   : > { %532 = vst [vmem:[%s1070_s16 + $0x48] sm:$0xff] %v340_v21  ;;  %v359_v59 = vmax.f32 %v167_v54, 0.0  ;;  %v170_v60 = vld [vmem:[%s1057_s23 + $0xf8] sm:$0xff]  ;;  %v360_v61 = vmax.f32 %v168_v56, 0.0  ;;  %v171_v62 = vld [vmem:[%s1057_s23 + $0x100] sm:$0xff]  ;;  %v361_v63 = vmax.f32 %v169_v58, 0.0 }
  0x37   : > { %533 = vst [vmem:[%s1070_s16 + $0x50] sm:$0xff] %v341_v23  ;;  %v172_v0 = vld [vmem:[%s1057_s23 + $0x108] sm:$0xff]  ;;  %v362_v1 = vmax.f32 %v170_v60, 0.0  ;;  %v173_v2 = vld [vmem:[%s1057_s23 + $0x110] sm:$0xff]  ;;  %v363_v3 = vmax.f32 %v171_v62, 0.0  ;;  %v174_v4 = vld [vmem:[%s1057_s23 + $0x118] sm:$0xff] }
  0x38   : > { %534 = vst [vmem:[%s1070_s16 + $0x58] sm:$0xff] %v342_v25  ;;  %v364_v5 = vmax.f32 %v172_v0, 0.0  ;;  %v175_v6 = vld [vmem:[%s1057_s23 + $0x120] sm:$0xff]  ;;  %v365_v7 = vmax.f32 %v173_v2, 0.0  ;;  %v176_v8 = vld [vmem:[%s1057_s23 + $0x128] sm:$0xff]  ;;  %v366_v9 = vmax.f32 %v174_v4, 0.0 }
  0x39   : > { %535 = vst [vmem:[%s1070_s16 + $0x60] sm:$0xff] %v343_v27  ;;  %v177_v10 = vld [vmem:[%s1057_s23 + $0x130] sm:$0xff]  ;;  %v367_v11 = vmax.f32 %v175_v6, 0.0  ;;  %v178_v12 = vld [vmem:[%s1057_s23 + $0x138] sm:$0xff]  ;;  %v368_v13 = vmax.f32 %v176_v8, 0.0  ;;  %v179_v14 = vld [vmem:[%s1057_s23 + $0x140] sm:$0xff] }
  0x3a   : > { %536 = vst [vmem:[%s1070_s16 + $0x68] sm:$0xff] %v344_v29  ;;  %v369_v15 = vmax.f32 %v177_v10, 0.0  ;;  %v180_v16 = vld [vmem:[%s1057_s23 + $0x148] sm:$0xff]  ;;  %v370_v17 = vmax.f32 %v178_v12, 0.0  ;;  %v181_v18 = vld [vmem:[%s1057_s23 + $0x150] sm:$0xff]  ;;  %v371_v19 = vmax.f32 %v179_v14, 0.0 }
  0x3b   : > { %537 = vst [vmem:[%s1070_s16 + $0x70] sm:$0xff] %v345_v31  ;;  %v182_v20 = vld [vmem:[%s1057_s23 + $0x158] sm:$0xff]  ;;  %v372_v21 = vmax.f32 %v180_v16, 0.0  ;;  %v183_v22 = vld [vmem:[%s1057_s23 + $0x160] sm:$0xff]  ;;  %v373_v23 = vmax.f32 %v181_v18, 0.0  ;;  %v184_v24 = vld [vmem:[%s1057_s23 + $0x168] sm:$0xff] }
  0x3c   : > { %538 = vst [vmem:[%s1070_s16 + $0x78] sm:$0xff] %v346_v33  ;;  %v374_v25 = vmax.f32 %v182_v20, 0.0  ;;  %v185_v26 = vld [vmem:[%s1057_s23 + $0x170] sm:$0xff]  ;;  %v375_v27 = vmax.f32 %v183_v22, 0.0  ;;  %v186_v28 = vld [vmem:[%s1057_s23 + $0x178] sm:$0xff]  ;;  %v376_v29 = vmax.f32 %v184_v24, 0.0 }
  0x3d   : > { %539 = vst [vmem:[%s1070_s16 + $0x80] sm:$0xff] %v347_v35  ;;  %v187_v30 = vld [vmem:[%s1057_s23 + $0x180] sm:$0xff]  ;;  %v377_v31 = vmax.f32 %v185_v26, 0.0  ;;  %v188_v32 = vld [vmem:[%s1057_s23 + $0x188] sm:$0xff]  ;;  %v378_v33 = vmax.f32 %v186_v28, 0.0  ;;  %v189_v34 = vld [vmem:[%s1057_s23 + $0x190] sm:$0xff] }
  0x3e   : > { %540 = vst [vmem:[%s1070_s16 + $0x88] sm:$0xff] %v348_v37  ;;  %v379_v35 = vmax.f32 %v187_v30, 0.0  ;;  %v190_v36 = vld [vmem:[%s1057_s23 + $0x198] sm:$0xff]  ;;  %v380_v37 = vmax.f32 %v188_v32, 0.0  ;;  %v191_v38 = vld [vmem:[%s1057_s23 + $0x1a0] sm:$0xff]  ;;  %v192_v40 = vld [vmem:[%s1057_s23 + $0x1a8] sm:$0xff] }
  0x3f   : > { %541 = vst [vmem:[%s1070_s16 + $0x90] sm:$0xff] %v349_v39  ;;  %v381_v39 = vmax.f32 %v189_v34, 0.0  ;;  %v193_v42 = vld [vmem:[%s1057_s23 + $0x1b0] sm:$0xff]  ;;  %v194_v44 = vld [vmem:[%s1057_s23 + $0x1b8] sm:$0xff]  ;;  %v195_v46 = vld [vmem:[%s1057_s23 + $0x1c0] sm:$0xff]  ;;  %s730_s28 = sshll.u32 %s727_s26, 4  ;;  %s731_s28 = int_to_ptr.hbm [resolvable:$true] %s730_s28 }
  0x40   : > { %542 = vst [vmem:[%s1070_s16 + $0x98] sm:$0xff] %v350_v41  ;;  %v382_v41 = vmax.f32 %v190_v36, 0.0  ;;  %v196_v48 = vld [vmem:[%s1057_s23 + $0x1c8] sm:$0xff]  ;;  %v197_v50 = vld [vmem:[%s1057_s23 + $0x1d0] sm:$0xff]  ;;  %v198_v52 = vld [vmem:[%s1057_s23 + $0x1d8] sm:$0xff]  ;;  %s716_s29 = scalar_lea.sflag [#allocation4], %s1053_s20 }
  0x41   : > { %543 = vst [vmem:[%s1070_s16 + $0xa0] sm:$0xff] %v351_v43  ;;  %v383_v43 = vmax.f32 %v191_v38, 0.0  ;;  %v199_v54 = vld [vmem:[%s1057_s23 + $0x1e0] sm:$0xff]  ;;  %v200_v56 = vld [vmem:[%s1057_s23 + $0x1e8] sm:$0xff]  ;;  %v201_v58 = vld [vmem:[%s1057_s23 + $0x1f0] sm:$0xff]  ;;  %s910_s30 = sshra.s32 %s731_s28, 4  ;;  %s911_s30 = int_to_ptr.hbm [resolvable:$true] %s910_s30 }
  0x42   : > { %544 = vst [vmem:[%s1070_s16 + $0xa8] sm:$0xff] %v352_v45  ;;  %v384_v45 = vmax.f32 %v192_v40, 0.0  ;;  %v202_v60 = vld [vmem:[%s1057_s23 + $0x1f8] sm:$0xff]  ;;  %v203_v62 = vld [vmem:[%s1057_s23 + $0x200] sm:$0xff]  ;;  %v204_v0 = vld [vmem:[%s1057_s23 + $0x208] sm:$0xff]  ;;  %s912_s2 = scalar_lea.hbm %s911_s30, 1536  ;;  %p917_p1 = scmp.lt.s32.totalorder %s911_s30, %s1483_s1 }
  0x43   : > { %545 = vst [vmem:[%s1070_s16 + $0xb0] sm:$0xff] %v353_v47  ;;  %v385_v47 = vmax.f32 %v193_v42, 0.0  ;;  %v205_v2 = vld [vmem:[%s1057_s23 + $0x210] sm:$0xff]  ;;  %v206_v4 = vld [vmem:[%s1057_s23 + $0x218] sm:$0xff]  ;;  %v207_v6 = vld [vmem:[%s1057_s23 + $0x220] sm:$0xff]  ;;  %p913_p6 = scmp.ne.s32.totalorder %s911_s30, %s912_s2  ;;  %s916_s5 = scalar_lea.hbm %s1483_s1, 6144 }
  0x44   : > { %546 = vst [vmem:[%s1070_s16 + $0xb8] sm:$0xff] %v354_v49  ;;  %v386_v49 = vmax.f32 %v194_v44, 0.0  ;;  %v208_v8 = vld [vmem:[%s1057_s23 + $0x228] sm:$0xff]  ;;  %v209_v10 = vld [vmem:[%s1057_s23 + $0x230] sm:$0xff]  ;;  %v210_v12 = vld [vmem:[%s1057_s23 + $0x238] sm:$0xff]  ;;  %p918_p2 = scmp.lt.s32.totalorder %s916_s5, %s912_s2 }
  0x45   : > { %547 = vst [vmem:[%s1070_s16 + $0xc0] sm:$0xff] %v355_v51  ;;  %v387_v51 = vmax.f32 %v195_v46, 0.0  ;;  %v211_v14 = vld [vmem:[%s1057_s23 + $0x240] sm:$0xff]  ;;  %v212_v16 = vld [vmem:[%s1057_s23 + $0x248] sm:$0xff]  ;;  %v213_v18 = vld [vmem:[%s1057_s23 + $0x250] sm:$0xff]  ;;  %p914_p12 = pnand %p913_p6, %p1023_p10 }
  0x46   : > { %548 = vst [vmem:[%s1070_s16 + $0xc8] sm:$0xff] %v356_v53  ;;  %v388_v53 = vmax.f32 %v196_v48, 0.0  ;;  %v214_v20 = vld [vmem:[%s1057_s23 + $0x258] sm:$0xff]  ;;  %v215_v22 = vld [vmem:[%s1057_s23 + $0x260] sm:$0xff]  ;;  %v216_v24 = vld [vmem:[%s1057_s23 + $0x268] sm:$0xff]  ;;  %p919_p3 = por %p918_p2, %p917_p1 }
  0x47   : > { %549 = vst [vmem:[%s1070_s16 + $0xd0] sm:$0xff] %v357_v55  ;;  %v389_v55 = vmax.f32 %v197_v50, 0.0  ;;  %v217_v26 = vld [vmem:[%s1057_s23 + $0x270] sm:$0xff]  ;;  %v218_v28 = vld [vmem:[%s1057_s23 + $0x278] sm:$0xff]  ;;  %v219_v30 = vld [vmem:[%s1057_s23 + $0x280] sm:$0xff]  ;;  %p915_p0 = pneg %p914_p12 }
  0x48   : > { %550 = vst [vmem:[%s1070_s16 + $0xd8] sm:$0xff] %v358_v57  ;;  %v390_v57 = vmax.f32 %v198_v52, 0.0  ;;  %v220_v32 = vld [vmem:[%s1057_s23 + $0x288] sm:$0xff]  ;;  %v221_v34 = vld [vmem:[%s1057_s23 + $0x290] sm:$0xff]  ;;  %v222_v36 = vld [vmem:[%s1057_s23 + $0x298] sm:$0xff] }
  0x49   : > { %551 = vst [vmem:[%s1070_s16 + $0xe0] sm:$0xff] %v359_v59  ;;  %v391_v59 = vmax.f32 %v199_v54, 0.0  ;;  %v223_v38 = vld [vmem:[%s1057_s23 + $0x2a0] sm:$0xff]  ;;  %v224_v40 = vld [vmem:[%s1057_s23 + $0x2a8] sm:$0xff]  ;;  %v225_v42 = vld [vmem:[%s1057_s23 + $0x2b0] sm:$0xff]  ;;  %p920_p4 = pnand %p919_p3, %p915_p0 }
  0x4a   : > { %552 = vst [vmem:[%s1070_s16 + $0xe8] sm:$0xff] %v360_v61  ;;  %v392_v61 = vmax.f32 %v200_v56, 0.0  ;;  %v226_v44 = vld [vmem:[%s1057_s23 + $0x2b8] sm:$0xff]  ;;  %v227_v46 = vld [vmem:[%s1057_s23 + $0x2c0] sm:$0xff]  ;;  %v228_v48 = vld [vmem:[%s1057_s23 + $0x2c8] sm:$0xff] }
  0x4b   : > { %553 = vst [vmem:[%s1070_s16 + $0xf0] sm:$0xff] %v361_v63  ;;  %v393_v63 = vmax.f32 %v201_v58, 0.0  ;;  %v229_v50 = vld [vmem:[%s1057_s23 + $0x2d0] sm:$0xff]  ;;  %v230_v52 = vld [vmem:[%s1057_s23 + $0x2d8] sm:$0xff]  ;;  %v231_v54 = vld [vmem:[%s1057_s23 + $0x2e0] sm:$0xff] }
  0x4c   : > { %554 = vst [vmem:[%s1070_s16 + $0xf8] sm:$0xff] %v362_v1  ;;  %v394_v1 = vmax.f32 %v202_v60, 0.0  ;;  %v232_v56 = vld [vmem:[%s1057_s23 + $0x2e8] sm:$0xff]  ;;  %v233_v58 = vld [vmem:[%s1057_s23 + $0x2f0] sm:$0xff]  ;;  %v234_v60 = vld [vmem:[%s1057_s23 + $0x2f8] sm:$0xff] }
  0x4d   : > { %555 = vst [vmem:[%s1070_s16 + $0x100] sm:$0xff] %v363_v3  ;;  %v395_v3 = vmax.f32 %v203_v62, 0.0  ;;  %v235_v62 = vld [vmem:[%s1057_s23 + $0x300] sm:$0xff] }
  0x4e   : > { %556 = vst [vmem:[%s1070_s16 + $0x108] sm:$0xff] %v364_v5  ;;  %v396_v5 = vmax.f32 %v204_v0, 0.0  ;;  %v236_v0 = vld [vmem:[%s1057_s23 + $0x308] sm:$0xff] }
  0x4f   : > { %557 = vst [vmem:[%s1070_s16 + $0x110] sm:$0xff] %v365_v7  ;;  %v397_v7 = vmax.f32 %v205_v2, 0.0  ;;  %v237_v2 = vld [vmem:[%s1057_s23 + $0x310] sm:$0xff] }
  0x50   : > { %558 = vst [vmem:[%s1070_s16 + $0x118] sm:$0xff] %v366_v9  ;;  %v398_v9 = vmax.f32 %v206_v4, 0.0  ;;  %v238_v4 = vld [vmem:[%s1057_s23 + $0x318] sm:$0xff] }
  0x51   : > { %559 = vst [vmem:[%s1070_s16 + $0x120] sm:$0xff] %v367_v11  ;;  %v399_v11 = vmax.f32 %v207_v6, 0.0  ;;  %v239_v6 = vld [vmem:[%s1057_s23 + $0x320] sm:$0xff] }
  0x52   : > { %560 = vst [vmem:[%s1070_s16 + $0x128] sm:$0xff] %v368_v13  ;;  %v400_v13 = vmax.f32 %v208_v8, 0.0  ;;  %v240_v8 = vld [vmem:[%s1057_s23 + $0x328] sm:$0xff] }
  0x53   : > { %561 = vst [vmem:[%s1070_s16 + $0x130] sm:$0xff] %v369_v15  ;;  %v401_v15 = vmax.f32 %v209_v10, 0.0  ;;  %v241_v10 = vld [vmem:[%s1057_s23 + $0x330] sm:$0xff] }
  0x54   : > { %562 = vst [vmem:[%s1070_s16 + $0x138] sm:$0xff] %v370_v17  ;;  %v402_v17 = vmax.f32 %v210_v12, 0.0  ;;  %v242_v12 = vld [vmem:[%s1057_s23 + $0x338] sm:$0xff] }
  0x55   : > { %563 = vst [vmem:[%s1070_s16 + $0x140] sm:$0xff] %v371_v19  ;;  %v403_v19 = vmax.f32 %v211_v14, 0.0  ;;  %v243_v14 = vld [vmem:[%s1057_s23 + $0x340] sm:$0xff] }
  0x56   : > { %564 = vst [vmem:[%s1070_s16 + $0x148] sm:$0xff] %v372_v21  ;;  %v404_v21 = vmax.f32 %v212_v16, 0.0  ;;  %v244_v16 = vld [vmem:[%s1057_s23 + $0x348] sm:$0xff] }
  0x57   : > { %565 = vst [vmem:[%s1070_s16 + $0x150] sm:$0xff] %v373_v23  ;;  %v405_v23 = vmax.f32 %v213_v18, 0.0  ;;  %v245_v18 = vld [vmem:[%s1057_s23 + $0x350] sm:$0xff] }
  0x58   : > { %566 = vst [vmem:[%s1070_s16 + $0x158] sm:$0xff] %v374_v25  ;;  %v406_v25 = vmax.f32 %v214_v20, 0.0  ;;  %v246_v20 = vld [vmem:[%s1057_s23 + $0x358] sm:$0xff] }
  0x59   : > { %567 = vst [vmem:[%s1070_s16 + $0x160] sm:$0xff] %v375_v27  ;;  %v407_v27 = vmax.f32 %v215_v22, 0.0  ;;  %v247_v22 = vld [vmem:[%s1057_s23 + $0x360] sm:$0xff] }
  0x5a   : > { %568 = vst [vmem:[%s1070_s16 + $0x168] sm:$0xff] %v376_v29  ;;  %v408_v29 = vmax.f32 %v216_v24, 0.0  ;;  %v248_v24 = vld [vmem:[%s1057_s23 + $0x368] sm:$0xff] }
  0x5b   : > { %569 = vst [vmem:[%s1070_s16 + $0x170] sm:$0xff] %v377_v31  ;;  %v409_v31 = vmax.f32 %v217_v26, 0.0  ;;  %v249_v26 = vld [vmem:[%s1057_s23 + $0x370] sm:$0xff] }
  0x5c   : > { %570 = vst [vmem:[%s1070_s16 + $0x178] sm:$0xff] %v378_v33  ;;  %v410_v33 = vmax.f32 %v218_v28, 0.0  ;;  %v250_v28 = vld [vmem:[%s1057_s23 + $0x378] sm:$0xff] }
  0x5d   : > { %571 = vst [vmem:[%s1070_s16 + $0x180] sm:$0xff] %v379_v35  ;;  %v411_v35 = vmax.f32 %v219_v30, 0.0  ;;  %v251_v30 = vld [vmem:[%s1057_s23 + $0x380] sm:$0xff] }
  0x5e   : > { %572 = vst [vmem:[%s1070_s16 + $0x188] sm:$0xff] %v380_v37  ;;  %v412_v37 = vmax.f32 %v220_v32, 0.0  ;;  %v252_v32 = vld [vmem:[%s1057_s23 + $0x388] sm:$0xff] }
  0x5f   : > { %573 = vst [vmem:[%s1070_s16 + $0x190] sm:$0xff] %v381_v39  ;;  %v413_v39 = vmax.f32 %v221_v34, 0.0  ;;  %v253_v34 = vld [vmem:[%s1057_s23 + $0x390] sm:$0xff] }
  0x60   : > { %574 = vst [vmem:[%s1070_s16 + $0x198] sm:$0xff] %v382_v41  ;;  %v414_v41 = vmax.f32 %v222_v36, 0.0  ;;  %v254_v36 = vld [vmem:[%s1057_s23 + $0x398] sm:$0xff] }
  0x61   : > { %575 = vst [vmem:[%s1070_s16 + $0x1a0] sm:$0xff] %v383_v43  ;;  %v415_v43 = vmax.f32 %v223_v38, 0.0  ;;  %v255_v38 = vld [vmem:[%s1057_s23 + $0x3a0] sm:$0xff] }
  0x62   : > { %576 = vst [vmem:[%s1070_s16 + $0x1a8] sm:$0xff] %v384_v45  ;;  %v416_v45 = vmax.f32 %v224_v40, 0.0  ;;  %v256_v40 = vld [vmem:[%s1057_s23 + $0x3a8] sm:$0xff] }
  0x63   : > { %577 = vst [vmem:[%s1070_s16 + $0x1b0] sm:$0xff] %v385_v47  ;;  %v417_v47 = vmax.f32 %v225_v42, 0.0  ;;  %v257_v42 = vld [vmem:[%s1057_s23 + $0x3b0] sm:$0xff] }
  0x64   : > { %578 = vst [vmem:[%s1070_s16 + $0x1b8] sm:$0xff] %v386_v49  ;;  %v418_v49 = vmax.f32 %v226_v44, 0.0  ;;  %v258_v44 = vld [vmem:[%s1057_s23 + $0x3b8] sm:$0xff] }
  0x65   : > { %579 = vst [vmem:[%s1070_s16 + $0x1c0] sm:$0xff] %v387_v51  ;;  %v419_v51 = vmax.f32 %v227_v46, 0.0  ;;  %v259_v46 = vld [vmem:[%s1057_s23 + $0x3c0] sm:$0xff] }
  0x66   : > { %580 = vst [vmem:[%s1070_s16 + $0x1c8] sm:$0xff] %v388_v53  ;;  %v420_v53 = vmax.f32 %v228_v48, 0.0  ;;  %v260_v48 = vld [vmem:[%s1057_s23 + $0x3c8] sm:$0xff] }
  0x67   : > { %581 = vst [vmem:[%s1070_s16 + $0x1d0] sm:$0xff] %v389_v55  ;;  %v421_v55 = vmax.f32 %v229_v50, 0.0  ;;  %v261_v50 = vld [vmem:[%s1057_s23 + $0x3d0] sm:$0xff] }
  0x68   : > { %582 = vst [vmem:[%s1070_s16 + $0x1d8] sm:$0xff] %v390_v57  ;;  %v422_v57 = vmax.f32 %v230_v52, 0.0  ;;  %v262_v52 = vld [vmem:[%s1057_s23 + $0x3d8] sm:$0xff] }
  0x69   : > { %583 = vst [vmem:[%s1070_s16 + $0x1e0] sm:$0xff] %v391_v59  ;;  %v423_v59 = vmax.f32 %v231_v54, 0.0  ;;  %v263_v54 = vld [vmem:[%s1057_s23 + $0x3e0] sm:$0xff] }
  0x6a   : > { %584 = vst [vmem:[%s1070_s16 + $0x1e8] sm:$0xff] %v392_v61  ;;  %v424_v61 = vmax.f32 %v232_v56, 0.0  ;;  %v264_v56 = vld [vmem:[%s1057_s23 + $0x3e8] sm:$0xff] }
  0x6b   : > { %585 = vst [vmem:[%s1070_s16 + $0x1f0] sm:$0xff] %v393_v63  ;;  %v425_v63 = vmax.f32 %v233_v58, 0.0  ;;  %v265_v58 = vld [vmem:[%s1057_s23 + $0x3f0] sm:$0xff] }
  0x6c   : > { %586 = vst [vmem:[%s1070_s16 + $0x1f8] sm:$0xff] %v394_v1  ;;  %v426_v1 = vmax.f32 %v234_v60, 0.0  ;;  %v266_v60 = vld [vmem:[%s1057_s23 + $0x3f8] sm:$0xff] }
  0x6d   : > { %587 = vst [vmem:[%s1070_s16 + $0x200] sm:$0xff] %v395_v3  ;;  %v427_v3 = vmax.f32 %v235_v62, 0.0  ;;  %v267_v62 = vld [vmem:[%s1057_s23 + $0x400] sm:$0xff] }
  0x6e   : > { %588 = vst [vmem:[%s1070_s16 + $0x208] sm:$0xff] %v396_v5  ;;  %v428_v5 = vmax.f32 %v236_v0, 0.0  ;;  %v268_v0 = vld [vmem:[%s1057_s23 + $0x408] sm:$0xff] }
  0x6f   : > { %589 = vst [vmem:[%s1070_s16 + $0x210] sm:$0xff] %v397_v7  ;;  %v429_v7 = vmax.f32 %v237_v2, 0.0  ;;  %v269_v2 = vld [vmem:[%s1057_s23 + $0x410] sm:$0xff] }
  0x70   : > { %590 = vst [vmem:[%s1070_s16 + $0x218] sm:$0xff] %v398_v9  ;;  %v430_v9 = vmax.f32 %v238_v4, 0.0  ;;  %v270_v4 = vld [vmem:[%s1057_s23 + $0x418] sm:$0xff] }
  0x71   : > { %591 = vst [vmem:[%s1070_s16 + $0x220] sm:$0xff] %v399_v11  ;;  %v431_v11 = vmax.f32 %v239_v6, 0.0  ;;  %v271_v6 = vld [vmem:[%s1057_s23 + $0x420] sm:$0xff] }
  0x72   : > { %592 = vst [vmem:[%s1070_s16 + $0x228] sm:$0xff] %v400_v13  ;;  %v432_v13 = vmax.f32 %v240_v8, 0.0  ;;  %v272_v8 = vld [vmem:[%s1057_s23 + $0x428] sm:$0xff] }
  0x73   : > { %593 = vst [vmem:[%s1070_s16 + $0x230] sm:$0xff] %v401_v15  ;;  %v433_v15 = vmax.f32 %v241_v10, 0.0  ;;  %v273_v10 = vld [vmem:[%s1057_s23 + $0x430] sm:$0xff] }
  0x74   : > { %594 = vst [vmem:[%s1070_s16 + $0x238] sm:$0xff] %v402_v17  ;;  %v434_v17 = vmax.f32 %v242_v12, 0.0  ;;  %v274_v12 = vld [vmem:[%s1057_s23 + $0x438] sm:$0xff] }
  0x75   : > { %595 = vst [vmem:[%s1070_s16 + $0x240] sm:$0xff] %v403_v19  ;;  %v435_v19 = vmax.f32 %v243_v14, 0.0  ;;  %v275_v14 = vld [vmem:[%s1057_s23 + $0x440] sm:$0xff] }
  0x76   : > { %596 = vst [vmem:[%s1070_s16 + $0x248] sm:$0xff] %v404_v21  ;;  %v436_v21 = vmax.f32 %v244_v16, 0.0  ;;  %v276_v16 = vld [vmem:[%s1057_s23 + $0x448] sm:$0xff] }
  0x77   : > { %597 = vst [vmem:[%s1070_s16 + $0x250] sm:$0xff] %v405_v23  ;;  %v437_v23 = vmax.f32 %v245_v18, 0.0  ;;  %v277_v18 = vld [vmem:[%s1057_s23 + $0x450] sm:$0xff] }
  0x78   : > { %598 = vst [vmem:[%s1070_s16 + $0x258] sm:$0xff] %v406_v25  ;;  %v438_v25 = vmax.f32 %v246_v20, 0.0  ;;  %v278_v20 = vld [vmem:[%s1057_s23 + $0x458] sm:$0xff] }
  0x79   : > { %599 = vst [vmem:[%s1070_s16 + $0x260] sm:$0xff] %v407_v27  ;;  %v439_v27 = vmax.f32 %v247_v22, 0.0  ;;  %v279_v22 = vld [vmem:[%s1057_s23 + $0x460] sm:$0xff] }
  0x7a   : > { %600 = vst [vmem:[%s1070_s16 + $0x268] sm:$0xff] %v408_v29  ;;  %v440_v29 = vmax.f32 %v248_v24, 0.0  ;;  %v280_v24 = vld [vmem:[%s1057_s23 + $0x468] sm:$0xff] }
  0x7b   : > { %601 = vst [vmem:[%s1070_s16 + $0x270] sm:$0xff] %v409_v31  ;;  %v441_v31 = vmax.f32 %v249_v26, 0.0  ;;  %v281_v26 = vld [vmem:[%s1057_s23 + $0x470] sm:$0xff] }
  0x7c   : > { %602 = vst [vmem:[%s1070_s16 + $0x278] sm:$0xff] %v410_v33  ;;  %v442_v33 = vmax.f32 %v250_v28, 0.0  ;;  %v282_v28 = vld [vmem:[%s1057_s23 + $0x478] sm:$0xff] }
  0x7d   : > { %603 = vst [vmem:[%s1070_s16 + $0x280] sm:$0xff] %v411_v35  ;;  %v443_v35 = vmax.f32 %v251_v30, 0.0  ;;  %v283_v30 = vld [vmem:[%s1057_s23 + $0x480] sm:$0xff] }
  0x7e   : > { %604 = vst [vmem:[%s1070_s16 + $0x288] sm:$0xff] %v412_v37  ;;  %v444_v37 = vmax.f32 %v252_v32, 0.0  ;;  %v284_v32 = vld [vmem:[%s1057_s23 + $0x488] sm:$0xff] }
  0x7f   : > { %605 = vst [vmem:[%s1070_s16 + $0x290] sm:$0xff] %v413_v39  ;;  %v445_v39 = vmax.f32 %v253_v34, 0.0  ;;  %v285_v34 = vld [vmem:[%s1057_s23 + $0x490] sm:$0xff] }
  0x80   : > { %606 = vst [vmem:[%s1070_s16 + $0x298] sm:$0xff] %v414_v41  ;;  %v446_v41 = vmax.f32 %v254_v36, 0.0  ;;  %v286_v36 = vld [vmem:[%s1057_s23 + $0x498] sm:$0xff] }
  0x81   : > { %607 = vst [vmem:[%s1070_s16 + $0x2a0] sm:$0xff] %v415_v43  ;;  %v447_v43 = vmax.f32 %v255_v38, 0.0  ;;  %v287_v38 = vld [vmem:[%s1057_s23 + $0x4a0] sm:$0xff] }
  0x82   : > { %608 = vst [vmem:[%s1070_s16 + $0x2a8] sm:$0xff] %v416_v45  ;;  %v448_v45 = vmax.f32 %v256_v40, 0.0  ;;  %v288_v40 = vld [vmem:[%s1057_s23 + $0x4a8] sm:$0xff] }
  0x83   : > { %609 = vst [vmem:[%s1070_s16 + $0x2b0] sm:$0xff] %v417_v47  ;;  %v449_v47 = vmax.f32 %v257_v42, 0.0  ;;  %v289_v42 = vld [vmem:[%s1057_s23 + $0x4b0] sm:$0xff] }
  0x84   : > { %610 = vst [vmem:[%s1070_s16 + $0x2b8] sm:$0xff] %v418_v49  ;;  %v450_v49 = vmax.f32 %v258_v44, 0.0  ;;  %v290_v44 = vld [vmem:[%s1057_s23 + $0x4b8] sm:$0xff] }
  0x85   : > { %611 = vst [vmem:[%s1070_s16 + $0x2c0] sm:$0xff] %v419_v51  ;;  %v451_v51 = vmax.f32 %v259_v46, 0.0  ;;  %v291_v46 = vld [vmem:[%s1057_s23 + $0x4c0] sm:$0xff] }
  0x86   : > { %612 = vst [vmem:[%s1070_s16 + $0x2c8] sm:$0xff] %v420_v53  ;;  %v452_v53 = vmax.f32 %v260_v48, 0.0  ;;  %v292_v48 = vld [vmem:[%s1057_s23 + $0x4c8] sm:$0xff] }
  0x87   : > { %613 = vst [vmem:[%s1070_s16 + $0x2d0] sm:$0xff] %v421_v55  ;;  %v453_v55 = vmax.f32 %v261_v50, 0.0  ;;  %v293_v50 = vld [vmem:[%s1057_s23 + $0x4d0] sm:$0xff] }
  0x88   : > { %614 = vst [vmem:[%s1070_s16 + $0x2d8] sm:$0xff] %v422_v57  ;;  %v454_v57 = vmax.f32 %v262_v52, 0.0  ;;  %v294_v52 = vld [vmem:[%s1057_s23 + $0x4d8] sm:$0xff] }
  0x89   : > { %615 = vst [vmem:[%s1070_s16 + $0x2e0] sm:$0xff] %v423_v59  ;;  %v455_v59 = vmax.f32 %v263_v54, 0.0  ;;  %v295_v54 = vld [vmem:[%s1057_s23 + $0x4e0] sm:$0xff] }
  0x8a   : > { %616 = vst [vmem:[%s1070_s16 + $0x2e8] sm:$0xff] %v424_v61  ;;  %v456_v61 = vmax.f32 %v264_v56, 0.0  ;;  %v296_v56 = vld [vmem:[%s1057_s23 + $0x4e8] sm:$0xff] }
  0x8b   : > { %617 = vst [vmem:[%s1070_s16 + $0x2f0] sm:$0xff] %v425_v63  ;;  %v457_v63 = vmax.f32 %v265_v58, 0.0  ;;  %v297_v58 = vld [vmem:[%s1057_s23 + $0x4f0] sm:$0xff] }
  0x8c   : > { %618 = vst [vmem:[%s1070_s16 + $0x2f8] sm:$0xff] %v426_v1  ;;  %v458_v1 = vmax.f32 %v266_v60, 0.0  ;;  %v298_v60 = vld [vmem:[%s1057_s23 + $0x4f8] sm:$0xff] }
  0x8d   : > { %619 = vst [vmem:[%s1070_s16 + $0x300] sm:$0xff] %v427_v3  ;;  %v459_v3 = vmax.f32 %v267_v62, 0.0  ;;  %v299_v62 = vld [vmem:[%s1057_s23 + $0x500] sm:$0xff] }
  0x8e   : > { %620 = vst [vmem:[%s1070_s16 + $0x308] sm:$0xff] %v428_v5  ;;  %v460_v5 = vmax.f32 %v268_v0, 0.0  ;;  %v300_v0 = vld [vmem:[%s1057_s23 + $0x508] sm:$0xff] }
  0x8f   : > { %621 = vst [vmem:[%s1070_s16 + $0x310] sm:$0xff] %v429_v7  ;;  %v461_v7 = vmax.f32 %v269_v2, 0.0  ;;  %v301_v2 = vld [vmem:[%s1057_s23 + $0x510] sm:$0xff] }
  0x90   : > { %622 = vst [vmem:[%s1070_s16 + $0x318] sm:$0xff] %v430_v9  ;;  %v462_v9 = vmax.f32 %v270_v4, 0.0  ;;  %v302_v4 = vld [vmem:[%s1057_s23 + $0x518] sm:$0xff] }
  0x91   : > { %623 = vst [vmem:[%s1070_s16 + $0x320] sm:$0xff] %v431_v11  ;;  %v463_v11 = vmax.f32 %v271_v6, 0.0  ;;  %v303_v6 = vld [vmem:[%s1057_s23 + $0x520] sm:$0xff] }
  0x92   : > { %624 = vst [vmem:[%s1070_s16 + $0x328] sm:$0xff] %v432_v13  ;;  %v464_v13 = vmax.f32 %v272_v8, 0.0  ;;  %v304_v8 = vld [vmem:[%s1057_s23 + $0x528] sm:$0xff] }
  0x93   : > { %625 = vst [vmem:[%s1070_s16 + $0x330] sm:$0xff] %v433_v15  ;;  %v465_v15 = vmax.f32 %v273_v10, 0.0  ;;  %v305_v10 = vld [vmem:[%s1057_s23 + $0x530] sm:$0xff] }
  0x94   : > { %626 = vst [vmem:[%s1070_s16 + $0x338] sm:$0xff] %v434_v17  ;;  %v466_v17 = vmax.f32 %v274_v12, 0.0  ;;  %v306_v12 = vld [vmem:[%s1057_s23 + $0x538] sm:$0xff] }
  0x95   : > { %627 = vst [vmem:[%s1070_s16 + $0x340] sm:$0xff] %v435_v19  ;;  %v467_v19 = vmax.f32 %v275_v14, 0.0  ;;  %v307_v14 = vld [vmem:[%s1057_s23 + $0x540] sm:$0xff] }
  0x96   : > { %628 = vst [vmem:[%s1070_s16 + $0x348] sm:$0xff] %v436_v21  ;;  %v468_v21 = vmax.f32 %v276_v16, 0.0  ;;  %v308_v16 = vld [vmem:[%s1057_s23 + $0x548] sm:$0xff] }
  0x97   : > { %629 = vst [vmem:[%s1070_s16 + $0x350] sm:$0xff] %v437_v23  ;;  %v469_v23 = vmax.f32 %v277_v18, 0.0  ;;  %v309_v18 = vld [vmem:[%s1057_s23 + $0x550] sm:$0xff] }
  0x98   : > { %630 = vst [vmem:[%s1070_s16 + $0x358] sm:$0xff] %v438_v25  ;;  %v470_v25 = vmax.f32 %v278_v20, 0.0  ;;  %v310_v20 = vld [vmem:[%s1057_s23 + $0x558] sm:$0xff] }
  0x99   : > { %631 = vst [vmem:[%s1070_s16 + $0x360] sm:$0xff] %v439_v27  ;;  %v471_v27 = vmax.f32 %v279_v22, 0.0  ;;  %v311_v22 = vld [vmem:[%s1057_s23 + $0x560] sm:$0xff] }
  0x9a   : > { %632 = vst [vmem:[%s1070_s16 + $0x368] sm:$0xff] %v440_v29  ;;  %v472_v29 = vmax.f32 %v280_v24, 0.0  ;;  %v312_v24 = vld [vmem:[%s1057_s23 + $0x568] sm:$0xff] }
  0x9b   : > { %633 = vst [vmem:[%s1070_s16 + $0x370] sm:$0xff] %v441_v31  ;;  %v473_v31 = vmax.f32 %v281_v26, 0.0  ;;  %v313_v26 = vld [vmem:[%s1057_s23 + $0x570] sm:$0xff] }
  0x9c   : > { %634 = vst [vmem:[%s1070_s16 + $0x378] sm:$0xff] %v442_v33  ;;  %v474_v33 = vmax.f32 %v282_v28, 0.0  ;;  %v314_v28 = vld [vmem:[%s1057_s23 + $0x578] sm:$0xff] }
  0x9d   : > { %635 = vst [vmem:[%s1070_s16 + $0x380] sm:$0xff] %v443_v35  ;;  %v475_v35 = vmax.f32 %v283_v30, 0.0  ;;  %v315_v30 = vld [vmem:[%s1057_s23 + $0x580] sm:$0xff] }
  0x9e   : > { %636 = vst [vmem:[%s1070_s16 + $0x388] sm:$0xff] %v444_v37  ;;  %v476_v37 = vmax.f32 %v284_v32, 0.0  ;;  %v316_v32 = vld [vmem:[%s1057_s23 + $0x588] sm:$0xff] }
  0x9f   : > { %637 = vst [vmem:[%s1070_s16 + $0x390] sm:$0xff] %v445_v39  ;;  %v477_v39 = vmax.f32 %v285_v34, 0.0  ;;  %v317_v34 = vld [vmem:[%s1057_s23 + $0x590] sm:$0xff] }
  0xa0   : > { %638 = vst [vmem:[%s1070_s16 + $0x398] sm:$0xff] %v446_v41  ;;  %v478_v41 = vmax.f32 %v286_v36, 0.0  ;;  %v318_v36 = vld [vmem:[%s1057_s23 + $0x598] sm:$0xff] }
  0xa1   : > { %639 = vst [vmem:[%s1070_s16 + $0x3a0] sm:$0xff] %v447_v43  ;;  %v479_v43 = vmax.f32 %v287_v38, 0.0  ;;  %v319_v38 = vld [vmem:[%s1057_s23 + $0x5a0] sm:$0xff] }
  0xa2   : > { %640 = vst [vmem:[%s1070_s16 + $0x3a8] sm:$0xff] %v448_v45  ;;  %v480_v45 = vmax.f32 %v288_v40, 0.0  ;;  %v320_v40 = vld [vmem:[%s1057_s23 + $0x5a8] sm:$0xff] }
  0xa3   : > { %641 = vst [vmem:[%s1070_s16 + $0x3b0] sm:$0xff] %v449_v47  ;;  %v481_v47 = vmax.f32 %v289_v42, 0.0  ;;  %v321_v42 = vld [vmem:[%s1057_s23 + $0x5b0] sm:$0xff] }
  0xa4   : > { %642 = vst [vmem:[%s1070_s16 + $0x3b8] sm:$0xff] %v450_v49  ;;  %v482_v49 = vmax.f32 %v290_v44, 0.0  ;;  %v322_v44 = vld [vmem:[%s1057_s23 + $0x5b8] sm:$0xff] }
  0xa5   : > { %643 = vst [vmem:[%s1070_s16 + $0x3c0] sm:$0xff] %v451_v51  ;;  %v483_v51 = vmax.f32 %v291_v46, 0.0  ;;  %v323_v46 = vld [vmem:[%s1057_s23 + $0x5c0] sm:$0xff] }
  0xa6   : > { %644 = vst [vmem:[%s1070_s16 + $0x3c8] sm:$0xff] %v452_v53  ;;  %v484_v53 = vmax.f32 %v292_v48, 0.0  ;;  %v324_v48 = vld [vmem:[%s1057_s23 + $0x5c8] sm:$0xff] }
  0xa7   : > { %645 = vst [vmem:[%s1070_s16 + $0x3d0] sm:$0xff] %v453_v55  ;;  %v485_v55 = vmax.f32 %v293_v50, 0.0  ;;  %v325_v50 = vld [vmem:[%s1057_s23 + $0x5d0] sm:$0xff] }
  0xa8   : > { %646 = vst [vmem:[%s1070_s16 + $0x3d8] sm:$0xff] %v454_v57  ;;  %v486_v57 = vmax.f32 %v294_v52, 0.0  ;;  %v326_v52 = vld [vmem:[%s1057_s23 + $0x5d8] sm:$0xff] }
  0xa9   : > { %647 = vst [vmem:[%s1070_s16 + $0x3e0] sm:$0xff] %v455_v59  ;;  %v487_v59 = vmax.f32 %v295_v54, 0.0  ;;  %v327_v54 = vld [vmem:[%s1057_s23 + $0x5e0] sm:$0xff] }
  0xaa   : > { %648 = vst [vmem:[%s1070_s16 + $0x3e8] sm:$0xff] %v456_v61  ;;  %v488_v61 = vmax.f32 %v296_v56, 0.0  ;;  %v328_v56 = vld [vmem:[%s1057_s23 + $0x5e8] sm:$0xff] }
  0xab   : > { %649 = vst [vmem:[%s1070_s16 + $0x3f0] sm:$0xff] %v457_v63  ;;  %v489_v63 = vmax.f32 %v297_v58, 0.0  ;;  %v329_v58 = vld [vmem:[%s1057_s23 + $0x5f0] sm:$0xff] }
  0xac   : > { %650 = vst [vmem:[%s1070_s16 + $0x3f8] sm:$0xff] %v458_v1  ;;  %v490_v1 = vmax.f32 %v298_v60, 0.0  ;;  %v330_v60 = vld [vmem:[%s1057_s23 + $0x5f8] sm:$0xff] }
  0xad   : > { %651 = vst [vmem:[%s1070_s16 + $0x400] sm:$0xff] %v459_v3  ;;  %v491_v3 = vmax.f32 %v299_v62, 0.0  ;;  %v521_v62 = vmax.f32 %v329_v58, 0.0 }
  0xae   : > { %652 = vst [vmem:[%s1070_s16 + $0x408] sm:$0xff] %v460_v5  ;;  %v492_v5 = vmax.f32 %v300_v0, 0.0 }
  0xaf   : > { %653 = vst [vmem:[%s1070_s16 + $0x410] sm:$0xff] %v461_v7  ;;  %v493_v7 = vmax.f32 %v301_v2, 0.0 }
  0xb0   : > { %654 = vst [vmem:[%s1070_s16 + $0x418] sm:$0xff] %v462_v9  ;;  %v494_v9 = vmax.f32 %v302_v4, 0.0 }
  0xb1   : > { %655 = vst [vmem:[%s1070_s16 + $0x420] sm:$0xff] %v463_v11  ;;  %v495_v11 = vmax.f32 %v303_v6, 0.0 }
  0xb2   : > { %656 = vst [vmem:[%s1070_s16 + $0x428] sm:$0xff] %v464_v13  ;;  %v496_v13 = vmax.f32 %v304_v8, 0.0 }
  0xb3   : > { %657 = vst [vmem:[%s1070_s16 + $0x430] sm:$0xff] %v465_v15  ;;  %v497_v15 = vmax.f32 %v305_v10, 0.0 }
  0xb4   : > { %658 = vst [vmem:[%s1070_s16 + $0x438] sm:$0xff] %v466_v17  ;;  %v498_v17 = vmax.f32 %v306_v12, 0.0 }
  0xb5   : > { %659 = vst [vmem:[%s1070_s16 + $0x440] sm:$0xff] %v467_v19  ;;  %v499_v19 = vmax.f32 %v307_v14, 0.0 }
  0xb6   : > { %660 = vst [vmem:[%s1070_s16 + $0x448] sm:$0xff] %v468_v21  ;;  %v500_v21 = vmax.f32 %v308_v16, 0.0 }
  0xb7   : > { %661 = vst [vmem:[%s1070_s16 + $0x450] sm:$0xff] %v469_v23  ;;  %v501_v23 = vmax.f32 %v309_v18, 0.0 }
  0xb8   : > { %662 = vst [vmem:[%s1070_s16 + $0x458] sm:$0xff] %v470_v25  ;;  %v502_v25 = vmax.f32 %v310_v20, 0.0 }
  0xb9   : > { %663 = vst [vmem:[%s1070_s16 + $0x460] sm:$0xff] %v471_v27  ;;  %v503_v27 = vmax.f32 %v311_v22, 0.0 }
  0xba   : > { %664 = vst [vmem:[%s1070_s16 + $0x468] sm:$0xff] %v472_v29  ;;  %v504_v29 = vmax.f32 %v312_v24, 0.0 }
  0xbb   : > { %665 = vst [vmem:[%s1070_s16 + $0x470] sm:$0xff] %v473_v31  ;;  %v505_v31 = vmax.f32 %v313_v26, 0.0 }
  0xbc   : > { %666 = vst [vmem:[%s1070_s16 + $0x478] sm:$0xff] %v474_v33  ;;  %v506_v33 = vmax.f32 %v314_v28, 0.0 }
  0xbd   : > { %667 = vst [vmem:[%s1070_s16 + $0x480] sm:$0xff] %v475_v35  ;;  %v507_v35 = vmax.f32 %v315_v30, 0.0 }
  0xbe   : > { %668 = vst [vmem:[%s1070_s16 + $0x488] sm:$0xff] %v476_v37  ;;  %v508_v37 = vmax.f32 %v316_v32, 0.0 }
  0xbf   : > { %669 = vst [vmem:[%s1070_s16 + $0x490] sm:$0xff] %v477_v39  ;;  %v509_v39 = vmax.f32 %v317_v34, 0.0 }
  0xc0   : > { %670 = vst [vmem:[%s1070_s16 + $0x498] sm:$0xff] %v478_v41  ;;  %v510_v41 = vmax.f32 %v318_v36, 0.0 }
  0xc1   : > { %671 = vst [vmem:[%s1070_s16 + $0x4a0] sm:$0xff] %v479_v43  ;;  %v511_v43 = vmax.f32 %v319_v38, 0.0 }
  0xc2   : > { %672 = vst [vmem:[%s1070_s16 + $0x4a8] sm:$0xff] %v480_v45  ;;  %v512_v45 = vmax.f32 %v320_v40, 0.0 }
  0xc3   : > { %673 = vst [vmem:[%s1070_s16 + $0x4b0] sm:$0xff] %v481_v47  ;;  %v513_v47 = vmax.f32 %v321_v42, 0.0 }
  0xc4   : > { %674 = vst [vmem:[%s1070_s16 + $0x4b8] sm:$0xff] %v482_v49  ;;  %v514_v49 = vmax.f32 %v322_v44, 0.0 }
  0xc5   : > { %675 = vst [vmem:[%s1070_s16 + $0x4c0] sm:$0xff] %v483_v51  ;;  %v515_v51 = vmax.f32 %v323_v46, 0.0 }
  0xc6   : > { %676 = vst [vmem:[%s1070_s16 + $0x4c8] sm:$0xff] %v484_v53  ;;  %v516_v53 = vmax.f32 %v324_v48, 0.0 }
  0xc7   : > { %677 = vst [vmem:[%s1070_s16 + $0x4d0] sm:$0xff] %v485_v55  ;;  %v517_v55 = vmax.f32 %v325_v50, 0.0 }
  0xc8   : > { %678 = vst [vmem:[%s1070_s16 + $0x4d8] sm:$0xff] %v486_v57  ;;  %v518_v57 = vmax.f32 %v326_v52, 0.0 }
  0xc9   : > { %679 = vst [vmem:[%s1070_s16 + $0x4e0] sm:$0xff] %v487_v59  ;;  %v519_v59 = vmax.f32 %v327_v54, 0.0 }
  0xca   : > { %680 = vst [vmem:[%s1070_s16 + $0x4e8] sm:$0xff] %v488_v61  ;;  %v520_v61 = vmax.f32 %v328_v56, 0.0 }
  0xcb   : > { %681 = vst [vmem:[%s1070_s16 + $0x4f0] sm:$0xff] %v489_v63  ;;  %v522_v63 = vmax.f32 %v330_v60, 0.0 }
  0xcc   : > { %682 = vst [vmem:[%s1070_s16 + $0x4f8] sm:$0xff] %v490_v1 }
  0xcd   : > { %683 = vst [vmem:[%s1070_s16 + $0x500] sm:$0xff] %v491_v3 }
  0xce   : > { %684 = vst [vmem:[%s1070_s16 + $0x508] sm:$0xff] %v492_v5 }
  0xcf   : > { %685 = vst [vmem:[%s1070_s16 + $0x510] sm:$0xff] %v493_v7 }
  0xd0   : > { %686 = vst [vmem:[%s1070_s16 + $0x518] sm:$0xff] %v494_v9 }
  0xd1   : > { %687 = vst [vmem:[%s1070_s16 + $0x520] sm:$0xff] %v495_v11 }
  0xd2   : > { %688 = vst [vmem:[%s1070_s16 + $0x528] sm:$0xff] %v496_v13 }
  0xd3   : > { %689 = vst [vmem:[%s1070_s16 + $0x530] sm:$0xff] %v497_v15 }
  0xd4   : > { %690 = vst [vmem:[%s1070_s16 + $0x538] sm:$0xff] %v498_v17 }
  0xd5   : > { %691 = vst [vmem:[%s1070_s16 + $0x540] sm:$0xff] %v499_v19 }
  0xd6   : > { %692 = vst [vmem:[%s1070_s16 + $0x548] sm:$0xff] %v500_v21 }
  0xd7   : > { %693 = vst [vmem:[%s1070_s16 + $0x550] sm:$0xff] %v501_v23 }
  0xd8   : > { %694 = vst [vmem:[%s1070_s16 + $0x558] sm:$0xff] %v502_v25 }
  0xd9   : > { %695 = vst [vmem:[%s1070_s16 + $0x560] sm:$0xff] %v503_v27 }
  0xda   : > { %696 = vst [vmem:[%s1070_s16 + $0x568] sm:$0xff] %v504_v29 }
  0xdb   : > { %697 = vst [vmem:[%s1070_s16 + $0x570] sm:$0xff] %v505_v31 }
  0xdc   : > { %698 = vst [vmem:[%s1070_s16 + $0x578] sm:$0xff] %v506_v33 }
  0xdd   : > { %699 = vst [vmem:[%s1070_s16 + $0x580] sm:$0xff] %v507_v35 }
  0xde   : > { %700 = vst [vmem:[%s1070_s16 + $0x588] sm:$0xff] %v508_v37 }
  0xdf   : > { %701 = vst [vmem:[%s1070_s16 + $0x590] sm:$0xff] %v509_v39 }
  0xe0   : > { %702 = vst [vmem:[%s1070_s16 + $0x598] sm:$0xff] %v510_v41 }
  0xe1   : > { %703 = vst [vmem:[%s1070_s16 + $0x5a0] sm:$0xff] %v511_v43 }
  0xe2   : > { %704 = vst [vmem:[%s1070_s16 + $0x5a8] sm:$0xff] %v512_v45 }
  0xe3   : > { %705 = vst [vmem:[%s1070_s16 + $0x5b0] sm:$0xff] %v513_v47 }
  0xe4   : > { %706 = vst [vmem:[%s1070_s16 + $0x5b8] sm:$0xff] %v514_v49 }
  0xe5   : > { %707 = vst [vmem:[%s1070_s16 + $0x5c0] sm:$0xff] %v515_v51 }
  0xe6   : > { %708 = vst [vmem:[%s1070_s16 + $0x5c8] sm:$0xff] %v516_v53 }
  0xe7   : > { %709 = vst [vmem:[%s1070_s16 + $0x5d0] sm:$0xff] %v517_v55 }
  0xe8   : > { %710 = vst [vmem:[%s1070_s16 + $0x5d8] sm:$0xff] %v518_v57 }
  0xe9   : > { %711 = vst [vmem:[%s1070_s16 + $0x5e0] sm:$0xff] %v519_v59 }
  0xea   : > { %712 = vst [vmem:[%s1070_s16 + $0x5e8] sm:$0xff] %v520_v61 }
  0xeb   : > { %713 = vst [vmem:[%s1070_s16 + $0x5f0] sm:$0xff] %v521_v62 }
  0xec   : > { %714 = vst [vmem:[%s1070_s16 + $0x5f8] sm:$0xff] %v522_v63 }
  0xed   : > { %923 = shalt.err (!%p920_p4)
}
  0xee   : > { %s966_s14 = smov 128   ;;  %s967_s19 = smov 8  }
  0xef   : > { %818 = dma.vmem_to_hbm [thread:$0]  (%p1023_p10), %s729_s27, 24576, %s731_s28, %s716_s29, %s966_s14, %s966_s14, %s967_s19  }
  0xf0 PF: > { %p829_p5 = scmp.ge.s32.totalorder %s962_s9, 2  ;;  %s745_s20 = sand.u32 1, %s950_s6  }
  0xf1   : > { %s746_s21 = scalar_lea.sflag [#allocation4], %s745_s20 }
  0xf2   : > { %p825_p7 = pnand %p829_p5, %p1027_p11 }
  0xf4   : > { %p826_p8 = pneg %p825_p7 }
  0xf6   : > { %945 = dma.done.wait (%p826_p8), %s746_s21, 24576  }
  0xf7   : > { %947 = vsyncadd (%p826_p8), %s746_s21, 4294942720  ;;  %p14_p9 = scmp.ge.s32.totalorder %s1003_s12, 6   ;;  %s1488_s6 = smov %s954_s7 }
  0xf8   : > { %s1489_s7 = smov %s958_s8  ;;  %s1490_s8 = smov %s1015_s15 }
  0xf9   : > { %s1491_s9 = smov %s1003_s12  ;;  %16 = sbr.rel (!%p14_p9) target bundleno = 5 (0x5), region = 69 }
  0xfe   :  { %752 = vsyncpa [#allocation3], 1 }
  0xff   :  { %754 = vsyncpa [#allocation3 + $0x1], 1 }
 0x100   :  { %755 = vsyncpa [#allocation4], 1 }
 0x101   :  { %757 = vsyncpa [#allocation4 + $0x1], 1 }

</bundles_post_ra>
